<compile_context>
chip_gen: v6e
topology: v6e:2x2x1
jax: 0.10.0
libtpu: 0.0.40
codegen_flags: <defaults>
</compile_context>

<pallas_src>
import jax
import jax.numpy as jnp
from jax.experimental import pallas as pl
from jax.experimental.pallas import tpu as pltpu


def _round_up(x: int, m: int) -> int:
    return ((x + m - 1) // m) * m


def _vmem_capacity_bytes() -> int:
    try:
        return int(pltpu.get_tpu_info().vmem_capacity_bytes)
    except Exception:
        return 64 << 20  # conservative default = v7x per-TensorCore VMEM


def make_hyper_predictor(hidden_size: int, matmul_dtype=jnp.bfloat16):
    H = hidden_size

    def kernel(repres_ref, mem_ref, ww_ref, bw_ref, wb_ref, wo_ref,
               bb_ref, bo_ref, out_ref):
        repres = repres_ref[...]                       # (TB, H)   f32
        mem = mem_ref[...]                             # (TB, 2H)  f32
        prompts = mem[:, :H]                           # no extra DMA; lane-aligned if H%128==0

        # w = tanh(hyper_w(prompts)) -- the only MXU matmul; f32 accumulation,
        # bias add + tanh stay f32 on VPU/EUP.
        w = jnp.tanh(
            jnp.dot(prompts.astype(matmul_dtype), ww_ref[...],
                    preferred_element_type=jnp.float32) + bw_ref[...])

        # b = tanh(hyper_b(repres_memory)): VPU mul + XLU lane reduce + SMEM scalar bias.
        b = jnp.tanh(
            jnp.sum(mem * wb_ref[...], axis=1, keepdims=True) + bb_ref[0, 0])

        # Fused predicted + fc_out reductions:
        #   sum(w*repres) + sum(repres*wo) == sum(repres * (w + wo_row))
        fused = jnp.sum(repres * (w + wo_ref[...]), axis=1, keepdims=True)

        # (predicted + fc_out) / 2
        out_ref[...] = (fused + b + bo_ref[0, 0]) * 0.5    # (TB, 1)

    def prepare_params(params):
        """One-time parameter prep; hoists the ww cast out of the per-call path.

        Expects ww stored (in, out) — transpose nn.Linear.weight when importing
        from PyTorch. bw/wb/wo are row vectors, bb/bo are (1, 1) scalars.
        """
        ww, bw, wb, bb, wo, bo = params
        return (ww.astype(matmul_dtype),
                bw.reshape(1, H).astype(jnp.float32),
                wb.reshape(1, 2 * H).astype(jnp.float32),
                bb.reshape(1, 1).astype(jnp.float32),
                wo.reshape(1, H).astype(jnp.float32),
                bo.reshape(1, 1).astype(jnp.float32))

    def forward(repres, repres_memory, params):
        ww, bw, wb, bb, wo, bo = params
        if ww.dtype != matmul_dtype:          # guard; prefer prepare_params() once
            ww = ww.astype(matmul_dtype)
        if repres.dtype != jnp.float32:
            repres = repres.astype(jnp.float32)
        if repres_memory.dtype != jnp.float32:
            repres_memory = repres_memory.astype(jnp.float32)

        B = repres.shape[0]
        f32b = 4
        weight_bytes = H * H * jnp.dtype(matmul_dtype).itemsize + 4 * H * f32b

        # Chip-aware VMEM budgeting (v7x: 64 MiB/TC, v5e/v6e: 128 MiB).
        vmem_cap = _vmem_capacity_bytes()
        budget = int(vmem_cap * 0.6)
        tb_cap = 512
        while tb_cap > 8 and (2 * weight_bytes
                              + 2 * tb_cap * (3 * H + 1) * f32b) > budget:
            tb_cap //= 2
        tb_cap = max(tb_cap, 8)

        if B <= 64:
            TB = B                            # one block == full batch dim (any B legal)
        elif B <= 2 * tb_cap:
            # nb >= 2 so the "parallel" axis splits across v7x's two TensorCores
            TB = min(tb_cap, _round_up((B + 1) // 2, 8))
        else:
            TB = tb_cap
        nb = pl.cdiv(B, TB)                   # ragged last block; no host-side padding

        tile_bytes = TB * (3 * H + 1) * f32b
        vmem_limit = int(min(max(2 * weight_bytes + 4 * tile_bytes + (2 << 20),
                                 32 << 20),
                             int(vmem_cap * 0.9)))

        cost = pl.CostEstimate(
            flops=int(2 * B * H * H + 8 * B * H),
            transcendentals=int(B * H + B),
            bytes_accessed=int(B * (3 * H + 1) * f32b + weight_bytes),
        )

        inputs = (repres, repres_memory, ww, bw, wb, wo, bb, bo)

        def build(single_buffer_weights: bool):
            def wspec(shape):
                # Index-invariant weights: request a single VMEM buffer (v7x win).
                if single_buffer_weights:
                    return pl.BlockSpec(shape, lambda i: (0, 0),
                                        pipeline_mode=pl.Buffered(1))
                return pl.BlockSpec(shape, lambda i: (0, 0))

            in_specs = [
                pl.BlockSpec((TB, H), lambda i: (i, 0)),            # repres tile
                pl.BlockSpec((TB, 2 * H), lambda i: (i, 0)),        # repres_memory tile
                wspec((H, H)),                                       # ww (VMEM-resident)
                wspec((1, H)),                                       # bw
                wspec((1, 2 * H)),                                   # wb row
                wspec((1, H)),                                       # wo row
                pl.BlockSpec(memory_space=pltpu.MemorySpace.SMEM),   # bb scalar
                pl.BlockSpec(memory_space=pltpu.MemorySpace.SMEM),   # bo scalar
            ]
            return pl.pallas_call(
                kernel,
                out_shape=jax.ShapeDtypeStruct((B, 1), jnp.float32),
                grid=(nb,),
                in_specs=in_specs,
                out_specs=pl.BlockSpec((TB, 1), lambda i: (i, 0)),
                compiler_params=pltpu.CompilerParams(
                    dimension_semantics=("parallel",),
                    vmem_limit_bytes=vmem_limit),
                cost_estimate=cost,
            )

        try:
            res = build(True)(*inputs)        # single-buffered resident weights
        except Exception:
            res = build(False)(*inputs)       # fallback: default double buffering
        # PyTorch: (predicted.squeeze() + out) / 2 -> shape (B,)
        return res[:, 0]

    return prepare_params, forward


def init_params(key, hidden_size: int):
    """Deterministic init. ww stored (in, out); wb / wo stored as row vectors."""
    H = hidden_size
    k1, k2, k3, k4, k5, k6 = jax.random.split(key, 6)
    ww = jax.random.normal(k1, (H, H), jnp.float32) * 0.1
    bw = jax.random.normal(k2, (1, H), jnp.float32) * 0.1
    wb = jax.random.normal(k3, (1, 2 * H), jnp.float32) * 0.1
    bb = jax.random.normal(k4, (1, 1), jnp.float32) * 0.1
    wo = jax.random.normal(k5, (1, H), jnp.float32) * 0.1
    bo = jax.random.normal(k6, (1, 1), jnp.float32) * 0.1
    return (ww, bw, wb, bb, wo, bo)


def reference_forward(repres, repres_memory, params, hidden_size):
    """Plain-JAX (f32) replica of the PyTorch forward."""
    H = hidden_size
    ww, bw, wb, bb, wo, bo = params
    prompts = repres_memory[:, :H]
    w = jnp.tanh(prompts @ ww + bw)
    b = jnp.tanh(jnp.sum(repres_memory * wb, axis=1, keepdims=True) + bb)
    predicted = jnp.sum(w * repres, axis=1, keepdims=True) + b
    out = jnp.sum(repres * wo, axis=1, keepdims=True) + bo
    return (predicted[:, 0] + out[:, 0]) / 2.0


if __name__ == "__main__":
    H = 128          # module default hidden_size; keeps lanes fully utilized
    key = jax.random.PRNGKey(0)
    kx, km, kp = jax.random.split(key, 3)
    params_f32 = init_params(kp, H)

    # --- small single-tile check (B = 8) -------------------------------------
    B = 8
    repres = jax.random.normal(kx, (B, H), jnp.float32)
    repres_memory = jax.random.normal(km, (B, 2 * H), jnp.float32)
    y_ref = reference_forward(repres, repres_memory, params_f32, H)

    prep32, fwd32 = make_hyper_predictor(H, matmul_dtype=jnp.float32)
    p32 = prep32(params_f32)                 # one-time prep (no per-call cast)
    y32 = jax.block_until_ready(fwd32(repres, repres_memory, p32))
    assert y32.shape == (B,)
    assert float(jnp.max(jnp.abs(y32 - y_ref))) < 1e-4

    prep16, fwd16 = make_hyper_predictor(H, matmul_dtype=jnp.bfloat16)
    p16 = prep16(params_f32)
    y16 = jax.block_until_ready(fwd16(repres, repres_memory, p16))
    assert y16.shape == (B,)
    assert float(jnp.max(jnp.abs(y16 - y_ref))) < 2.5e-1   # bf16 MXU operands

    # --- multi-tile + ragged last block (B = 100 -> TB = 56, nb = 2) ---------
    B2 = 100
    kx2, km2 = jax.random.split(jax.random.PRNGKey(1))
    repres2 = jax.random.normal(kx2, (B2, H), jnp.float32)
    repres_memory2 = jax.random.normal(km2, (B2, 2 * H), jnp.float32)
    y2_ref = reference_forward(repres2, repres_memory2, params_f32, H)
    y2 = jax.block_until_ready(fwd32(repres2, repres_memory2, p32))
    assert y2.shape == (B2,)
    assert float(jnp.max(jnp.abs(y2 - y2_ref))) < 1e-4

    print("KERNEL_OK")
</pallas_src>

<mosaic_0001>
module attributes {stable_mosaic.version = 11 : i64} {
  func.func @kernel(%arg0: i32, %arg1: memref<8x128xf32, #tpu.memory_space<vmem>>, %arg2: memref<8x256xf32, #tpu.memory_space<vmem>>, %arg3: memref<128x128xf32, #tpu.memory_space<vmem>>, %arg4: memref<1x128xf32, #tpu.memory_space<vmem>>, %arg5: memref<1x256xf32, #tpu.memory_space<vmem>>, %arg6: memref<1x128xf32, #tpu.memory_space<vmem>>, %arg7: memref<1x1xf32, #tpu.memory_space<smem>>, %arg8: memref<1x1xf32, #tpu.memory_space<smem>>, %arg9: memref<8x1xf32, #tpu.memory_space<vmem>>) attributes {dimension_semantics = [#tpu.dimension_semantics<parallel>], iteration_bounds = array<i64: 1>, scalar_prefetch = 0 : i64, scratch_operands = 0 : i64, tpu.core_type = #tpu.core_type<tc>, window_params = [{transform_indices = @transform_0, window_bounds = array<i64: 8, 128>}, {transform_indices = @transform_1, window_bounds = array<i64: 8, 256>}, {pipeline_mode = #tpu.pipeline_mode<synchronous>, transform_indices = @transform_2, window_bounds = array<i64: 128, 128>}, {pipeline_mode = #tpu.pipeline_mode<synchronous>, transform_indices = @transform_3, window_bounds = array<i64: 1, 128>}, {pipeline_mode = #tpu.pipeline_mode<synchronous>, transform_indices = @transform_4, window_bounds = array<i64: 1, 256>}, {pipeline_mode = #tpu.pipeline_mode<synchronous>, transform_indices = @transform_5, window_bounds = array<i64: 1, 128>}, {transform_indices = @transform_6, window_bounds = array<i64: 1, 1>}, {transform_indices = @transform_7, window_bounds = array<i64: 1, 1>}, {transform_indices = @transform_8, window_bounds = array<i64: 8, 1>}]} {
    %c0 = arith.constant 0 : index
    %c0_0 = arith.constant 0 : index
    %0 = vector.load %arg1[%c0, %c0_0] : memref<8x128xf32, #tpu.memory_space<vmem>>, vector<8x128xf32>
    %c0_1 = arith.constant 0 : index
    %c0_2 = arith.constant 0 : index
    %1 = vector.load %arg2[%c0_1, %c0_2] : memref<8x256xf32, #tpu.memory_space<vmem>>, vector<8x256xf32>
    %2 = vector.extract_strided_slice %1 {offsets = [0, 0], sizes = [8, 128], strides = [1, 1]} : vector<8x256xf32> to vector<8x128xf32>
    %c0_3 = arith.constant 0 : index
    %c0_4 = arith.constant 0 : index
    %3 = vector.load %arg3[%c0_3, %c0_4] : memref<128x128xf32, #tpu.memory_space<vmem>>, vector<128x128xf32>
    %cst = arith.constant dense<0.000000e+00> : vector<8x128xf32>
    %4 = tpu.matmul %2, %3, %cst {dimension_numbers = #tpu.dot_dimension_numbers<[1], [0], [0], [1], [0, 0, 1, 1], [], []>} : vector<8x128xf32>, vector<128x128xf32>, vector<8x128xf32> -> vector<8x128xf32>
    %c0_5 = arith.constant 0 : index
    %c0_6 = arith.constant 0 : index
    %5 = vector.load %arg4[%c0_5, %c0_6] : memref<1x128xf32, #tpu.memory_space<vmem>>, vector<1x128xf32>
    %6 = vector.broadcast %5 : vector<1x128xf32> to vector<8x128xf32>
    %7 = arith.addf %4, %6 : vector<8x128xf32>
    %8 = math.tanh %7 : vector<8x128xf32>
    %c0_7 = arith.constant 0 : index
    %c0_8 = arith.constant 0 : index
    %9 = vector.load %arg5[%c0_7, %c0_8] : memref<1x256xf32, #tpu.memory_space<vmem>>, vector<1x256xf32>
    %10 = vector.broadcast %9 : vector<1x256xf32> to vector<8x256xf32>
    %11 = arith.mulf %1, %10 : vector<8x256xf32>
    %cst_9 = arith.constant dense<0.000000e+00> : vector<8xf32>
    %12 = vector.multi_reduction <add>, %11, %cst_9 [1] : vector<8x256xf32> to vector<8xf32>
    %13 = vector.shape_cast %12 : vector<8xf32> to vector<8x1xf32>
    %c0_10 = arith.constant 0 : index
    %c0_11 = arith.constant 0 : index
    %14 = memref.load %arg7[%c0_10, %c0_11] : memref<1x1xf32, #tpu.memory_space<smem>>
    %15 = vector.broadcast %14 : f32 to vector<8x1xf32>
    %16 = arith.addf %13, %15 : vector<8x1xf32>
    %17 = math.tanh %16 : vector<8x1xf32>
    %c0_12 = arith.constant 0 : index
    %c0_13 = arith.constant 0 : index
    %18 = vector.load %arg6[%c0_12, %c0_13] : memref<1x128xf32, #tpu.memory_space<vmem>>, vector<1x128xf32>
    %19 = vector.broadcast %18 : vector<1x128xf32> to vector<8x128xf32>
    %20 = arith.addf %8, %19 : vector<8x128xf32>
    %21 = arith.mulf %0, %20 : vector<8x128xf32>
    %cst_14 = arith.constant dense<0.000000e+00> : vector<8xf32>
    %22 = vector.multi_reduction <add>, %21, %cst_14 [1] : vector<8x128xf32> to vector<8xf32>
    %23 = vector.shape_cast %22 : vector<8xf32> to vector<8x1xf32>
    %24 = arith.addf %23, %17 : vector<8x1xf32>
    %c0_15 = arith.constant 0 : index
    %c0_16 = arith.constant 0 : index
    %25 = memref.load %arg8[%c0_15, %c0_16] : memref<1x1xf32, #tpu.memory_space<smem>>
    %26 = vector.broadcast %25 : f32 to vector<8x1xf32>
    %27 = arith.addf %24, %26 : vector<8x1xf32>
    %cst_17 = arith.constant 5.000000e-01 : f32
    %28 = vector.broadcast %cst_17 : f32 to vector<8x1xf32>
    %29 = arith.mulf %27, %28 : vector<8x1xf32>
    %c0_18 = arith.constant 0 : index
    %c0_19 = arith.constant 0 : index
    %30 = vector.load %arg9[%c0_18, %c0_19] : memref<8x1xf32, #tpu.memory_space<vmem>>, vector<8x1xf32>
    tpu.vector_store %arg9[%c0_18, %c0_19], %29 {strides = array<i32>} : memref<8x1xf32, #tpu.memory_space<vmem>>, vector<8x1xf32>,
    return
  }
  func.func @transform_0(%arg0: i32) -> (i32, i32) {
    %c0_i32 = arith.constant 0 : i32
    %c0_i32_0 = arith.constant 0 : i32
    return %arg0, %c0_i32 : i32, i32
  }
  func.func @transform_1(%arg0: i32) -> (i32, i32) {
    %c0_i32 = arith.constant 0 : i32
    %c0_i32_0 = arith.constant 0 : i32
    return %arg0, %c0_i32 : i32, i32
  }
  func.func @transform_2(%arg0: i32) -> (i32, i32) {
    %c0_i32 = arith.constant 0 : i32
    %c0_i32_0 = arith.constant 0 : i32
    %c0_i32_1 = arith.constant 0 : i32
    return %c0_i32, %c0_i32_0 : i32, i32
  }
  func.func @transform_3(%arg0: i32) -> (i32, i32) {
    %c0_i32 = arith.constant 0 : i32
    %c0_i32_0 = arith.constant 0 : i32
    %c0_i32_1 = arith.constant 0 : i32
    return %c0_i32, %c0_i32_0 : i32, i32
  }
  func.func @transform_4(%arg0: i32) -> (i32, i32) {
    %c0_i32 = arith.constant 0 : i32
    %c0_i32_0 = arith.constant 0 : i32
    %c0_i32_1 = arith.constant 0 : i32
    return %c0_i32, %c0_i32_0 : i32, i32
  }
  func.func @transform_5(%arg0: i32) -> (i32, i32) {
    %c0_i32 = arith.constant 0 : i32
    %c0_i32_0 = arith.constant 0 : i32
    %c0_i32_1 = arith.constant 0 : i32
    return %c0_i32, %c0_i32_0 : i32, i32
  }
  func.func @transform_6(%arg0: i32) -> (i32, i32) {
    %c0_i32 = arith.constant 0 : i32
    %c0_i32_0 = arith.constant 0 : i32
    %c0_i32_1 = arith.constant 0 : i32
    return %c0_i32, %c0_i32_0 : i32, i32
  }
  func.func @transform_7(%arg0: i32) -> (i32, i32) {
    %c0_i32 = arith.constant 0 : i32
    %c0_i32_0 = arith.constant 0 : i32
    %c0_i32_1 = arith.constant 0 : i32
    return %c0_i32, %c0_i32_0 : i32, i32
  }
  func.func @transform_8(%arg0: i32) -> (i32, i32) {
    %c0_i32 = arith.constant 0 : i32
    %c0_i32_0 = arith.constant 0 : i32
    return %arg0, %c0_i32 : i32, i32
  }
}

module attributes {stable_mosaic.version = 11 : i64} {
  func.func @kernel(%arg0: i32, %arg1: memref<8x128xf32, #tpu.memory_space<vmem>>, %arg2: memref<8x256xf32, #tpu.memory_space<vmem>>, %arg3: memref<128x128xf32, #tpu.memory_space<vmem>>, %arg4: memref<1x128xf32, #tpu.memory_space<vmem>>, %arg5: memref<1x256xf32, #tpu.memory_space<vmem>>, %arg6: memref<1x128xf32, #tpu.memory_space<vmem>>, %arg7: memref<1x1xf32, #tpu.memory_space<smem>>, %arg8: memref<1x1xf32, #tpu.memory_space<smem>>, %arg9: memref<8x1xf32, #tpu.memory_space<vmem>>) attributes {dimension_semantics = [#tpu.dimension_semantics<parallel>], iteration_bounds = array<i64: 1>, scalar_prefetch = 0 : i64, scratch_operands = 0 : i64, tpu.core_type = #tpu.core_type<tc>, window_params = [{transform_indices = @transform_0, window_bounds = array<i64: 8, 128>}, {transform_indices = @transform_1, window_bounds = array<i64: 8, 256>}, {pipeline_mode = #tpu.pipeline_mode<synchronous>, transform_indices = @transform_2, window_bounds = array<i64: 128, 128>}, {pipeline_mode = #tpu.pipeline_mode<synchronous>, transform_indices = @transform_3, window_bounds = array<i64: 1, 128>}, {pipeline_mode = #tpu.pipeline_mode<synchronous>, transform_indices = @transform_4, window_bounds = array<i64: 1, 256>}, {pipeline_mode = #tpu.pipeline_mode<synchronous>, transform_indices = @transform_5, window_bounds = array<i64: 1, 128>}, {transform_indices = @transform_6, window_bounds = array<i64: 1, 1>}, {transform_indices = @transform_7, window_bounds = array<i64: 1, 1>}, {transform_indices = @transform_8, window_bounds = array<i64: 8, 1>}]} {
    %c0 = arith.constant 0 : index
    %c0_0 = arith.constant 0 : index
    %0 = vector.load %arg1[%c0, %c0_0] : memref<8x128xf32, #tpu.memory_space<vmem>>, vector<8x128xf32>
    %c0_1 = arith.constant 0 : index
    %c0_2 = arith.constant 0 : index
    %1 = vector.load %arg2[%c0_1, %c0_2] : memref<8x256xf32, #tpu.memory_space<vmem>>, vector<8x256xf32>
    %2 = vector.extract_strided_slice %1 {offsets = [0, 0], sizes = [8, 128], strides = [1, 1]} : vector<8x256xf32> to vector<8x128xf32>
    %c0_3 = arith.constant 0 : index
    %c0_4 = arith.constant 0 : index
    %3 = vector.load %arg3[%c0_3, %c0_4] : memref<128x128xf32, #tpu.memory_space<vmem>>, vector<128x128xf32>
    %cst = arith.constant dense<0.000000e+00> : vector<8x128xf32>
    %4 = tpu.matmul %2, %3, %cst {dimension_numbers = #tpu.dot_dimension_numbers<[1], [0], [0], [1], [0, 0, 1, 1], [], []>} : vector<8x128xf32>, vector<128x128xf32>, vector<8x128xf32> -> vector<8x128xf32>
    %c0_5 = arith.constant 0 : index
    %c0_6 = arith.constant 0 : index
    %5 = vector.load %arg4[%c0_5, %c0_6] : memref<1x128xf32, #tpu.memory_space<vmem>>, vector<1x128xf32>
    %6 = vector.broadcast %5 : vector<1x128xf32> to vector<8x128xf32>
    %7 = arith.addf %4, %6 : vector<8x128xf32>
    %8 = math.tanh %7 : vector<8x128xf32>
    %c0_7 = arith.constant 0 : index
    %c0_8 = arith.constant 0 : index
    %9 = vector.load %arg5[%c0_7, %c0_8] : memref<1x256xf32, #tpu.memory_space<vmem>>, vector<1x256xf32>
    %10 = vector.broadcast %9 : vector<1x256xf32> to vector<8x256xf32>
    %11 = arith.mulf %1, %10 : vector<8x256xf32>
    %cst_9 = arith.constant dense<0.000000e+00> : vector<8xf32>
    %12 = vector.multi_reduction <add>, %11, %cst_9 [1] : vector<8x256xf32> to vector<8xf32>
    %13 = vector.shape_cast %12 : vector<8xf32> to vector<8x1xf32>
    %c0_10 = arith.constant 0 : index
    %c0_11 = arith.constant 0 : index
    %14 = memref.load %arg7[%c0_10, %c0_11] : memref<1x1xf32, #tpu.memory_space<smem>>
    %15 = vector.broadcast %14 : f32 to vector<8x1xf32>
    %16 = arith.addf %13, %15 : vector<8x1xf32>
    %17 = math.tanh %16 : vector<8x1xf32>
    %c0_12 = arith.constant 0 : index
    %c0_13 = arith.constant 0 : index
    %18 = vector.load %arg6[%c0_12, %c0_13] : memref<1x128xf32, #tpu.memory_space<vmem>>, vector<1x128xf32>
    %19 = vector.broadcast %18 : vector<1x128xf32> to vector<8x128xf32>
    %20 = arith.addf %8, %19 : vector<8x128xf32>
    %21 = arith.mulf %0, %20 : vector<8x128xf32>
    %cst_14 = arith.constant dense<0.000000e+00> : vector<8xf32>
    %22 = vector.multi_reduction <add>, %21, %cst_14 [1] : vector<8x128xf32> to vector<8xf32>
    %23 = vector.shape_cast %22 : vector<8xf32> to vector<8x1xf32>
    %24 = arith.addf %23, %17 : vector<8x1xf32>
    %c0_15 = arith.constant 0 : index
    %c0_16 = arith.constant 0 : index
    %25 = memref.load %arg8[%c0_15, %c0_16] : memref<1x1xf32, #tpu.memory_space<smem>>
    %26 = vector.broadcast %25 : f32 to vector<8x1xf32>
    %27 = arith.addf %24, %26 : vector<8x1xf32>
    %cst_17 = arith.constant 5.000000e-01 : f32
    %28 = vector.broadcast %cst_17 : f32 to vector<8x1xf32>
    %29 = arith.mulf %27, %28 : vector<8x1xf32>
    %c0_18 = arith.constant 0 : index
    %c0_19 = arith.constant 0 : index
    %30 = vector.load %arg9[%c0_18, %c0_19] : memref<8x1xf32, #tpu.memory_space<vmem>>, vector<8x1xf32>
    tpu.vector_store %arg9[%c0_18, %c0_19], %29 {strides = array<i32>} : memref<8x1xf32, #tpu.memory_space<vmem>>, vector<8x1xf32>,
    return
  }
  func.func @transform_0(%arg0: i32) -> (i32, i32) {
    %c0_i32 = arith.constant 0 : i32
    %c0_i32_0 = arith.constant 0 : i32
    return %arg0, %c0_i32 : i32, i32
  }
  func.func @transform_1(%arg0: i32) -> (i32, i32) {
    %c0_i32 = arith.constant 0 : i32
    %c0_i32_0 = arith.constant 0 : i32
    return %arg0, %c0_i32 : i32, i32
  }
  func.func @transform_2(%arg0: i32) -> (i32, i32) {
    %c0_i32 = arith.constant 0 : i32
    %c0_i32_0 = arith.constant 0 : i32
    %c0_i32_1 = arith.constant 0 : i32
    return %c0_i32, %c0_i32_0 : i32, i32
  }
  func.func @transform_3(%arg0: i32) -> (i32, i32) {
    %c0_i32 = arith.constant 0 : i32
    %c0_i32_0 = arith.constant 0 : i32
    %c0_i32_1 = arith.constant 0 : i32
    return %c0_i32, %c0_i32_0 : i32, i32
  }
  func.func @transform_4(%arg0: i32) -> (i32, i32) {
    %c0_i32 = arith.constant 0 : i32
    %c0_i32_0 = arith.constant 0 : i32
    %c0_i32_1 = arith.constant 0 : i32
    return %c0_i32, %c0_i32_0 : i32, i32
  }
  func.func @transform_5(%arg0: i32) -> (i32, i32) {
    %c0_i32 = arith.constant 0 : i32
    %c0_i32_0 = arith.constant 0 : i32
    %c0_i32_1 = arith.constant 0 : i32
    return %c0_i32, %c0_i32_0 : i32, i32
  }
  func.func @transform_6(%arg0: i32) -> (i32, i32) {
    %c0_i32 = arith.constant 0 : i32
    %c0_i32_0 = arith.constant 0 : i32
    %c0_i32_1 = arith.constant 0 : i32
    return %c0_i32, %c0_i32_0 : i32, i32
  }
  func.func @transform_7(%arg0: i32) -> (i32, i32) {
    %c0_i32 = arith.constant 0 : i32
    %c0_i32_0 = arith.constant 0 : i32
    %c0_i32_1 = arith.constant 0 : i32
    return %c0_i32, %c0_i32_0 : i32, i32
  }
  func.func @transform_8(%arg0: i32) -> (i32, i32) {
    %c0_i32 = arith.constant 0 : i32
    %c0_i32_0 = arith.constant 0 : i32
    return %arg0, %c0_i32 : i32, i32
  }
}

</mosaic_0001>

<bundles_post_ra>
// kernel: tpu_custom_call.1
= control target key start
LH: loop header
LB: loop body
LE: loop exit
PB: predicated region body
PF: predicated region fallthrough
CT: control target
= control target key end

     0   :  { %15 = vsyncpa [#allocation5], 0  ;;  %s418_s0 = inlined_call_operand.hbm [shape: f32[8,128], index: 0, kind: input, shape index: {}]   ;;  %s419_s1 = inlined_call_operand.hbm [shape: f32[8,256], index: 1, kind: input, shape index: {}]   ;;  %s420_s2 = inlined_call_operand.hbm [shape: f32[128,128], index: 2, kind: input, shape index: {}]   ;;  %s421_s3 = inlined_call_operand.vmem [shape: f32[1,128], index: 3, kind: input, shape index: {}]   ;;  %s422_s4 = inlined_call_operand.vmem [shape: f32[1,256], index: 4, kind: input, shape index: {}]   ;;  %s423_s5 = inlined_call_operand.vmem [shape: f32[1,128], index: 5, kind: input, shape index: {}]   ;;  %s424_s6 = inlined_call_operand.<no memory space> [shape: f32[1,1], index: 6, kind: input, shape index: {}]   ;;  %s425_s7 = inlined_call_operand.<no memory space> [shape: f32[1,1], index: 7, kind: input, shape index: {}]   ;;  %s426_s8 = inlined_call_operand.vmem [shape: f32[8,1], index: 8, kind: output, shape index: {}]  }
   0x1   :  { %16 = vsyncpa [#allocation7], 0  ;;  %s339_s27 = smov [#allocation6]   ;;  %s340_s29 = smov [#allocation4]  }
   0x2   :  { %s33_s28 = sshll.u32 %s339_s27, 4  ;;  %s23_s30 = sshll.u32 %s340_s29, 4  ;;  %s34_s28 = int_to_ptr.vmem [resolvable:$true] %s33_s28  ;;  %s24_s30 = int_to_ptr.vmem [resolvable:$true] %s23_s30 }
   0x3   :  { %s283_s9 = scalar_lea.vmem %s34_s28, 256  ;;  %p288_p1 = scmp.lt.s32.totalorder %s34_s28, %s34_s28 }
   0x4   :  { %p284_p0 = scmp.ne.s32.totalorder %s34_s28, %s283_s9  ;;  %p289_p2 = scmp.lt.s32.totalorder %s283_s9, %s283_s9 }
   0x6   :  { %p290_p3 = por %p289_p2, %p288_p1 }
   0x8   :  { %p291_p4 = pnand %p290_p3, %p284_p0 }
   0xa   :  { %294 = shalt.err (!%p291_p4)
}
   0xb   :  { %36 = dma.hbm_to_vmem [thread:$0]  %s419_s1, 256, %s34_s28, [#allocation7]  }
   0xc   :  { %s303_s12 = scalar_lea.vmem %s24_s30, 128  ;;  %p308_p6 = scmp.lt.s32.totalorder %s24_s30, %s24_s30 }
   0xd   :  { %p304_p5 = scmp.ne.s32.totalorder %s24_s30, %s303_s12  ;;  %p309_p7 = scmp.lt.s32.totalorder %s303_s12, %s303_s12 }
   0xf   :  { %p310_p8 = por %p309_p7, %p308_p6 }
  0x11   :  { %p311_p9 = pnand %p310_p8, %p304_p5 }
  0x13   :  { %314 = shalt.err (!%p311_p9)
}
  0x14   :  { %26 = dma.hbm_to_vmem [thread:$0]  %s418_s0, 128, %s24_s30, [#allocation5]  }
  0x15   :  { %s341_s15 = smov [#allocation8]  }
  0x16   :  { %s42_s16 = sshll.u32 %s341_s15, 4  ;;  %s43_s16 = int_to_ptr.vmem [resolvable:$true] %s42_s16 }
  0x17   :  { %s323_s17 = scalar_lea.vmem %s43_s16, 2048  ;;  %p328_p11 = scmp.lt.s32.totalorder %s43_s16, %s43_s16 }
  0x18   :  { %p324_p10 = scmp.ne.s32.totalorder %s43_s16, %s323_s17  ;;  %p329_p12 = scmp.lt.s32.totalorder %s323_s17, %s323_s17 }
  0x1a   :  { %p330_p13 = por %p329_p12, %p328_p11 }
  0x1c   :  { %p331_p0 = pnand %p330_p13, %p324_p10 }
  0x1e   :  { %334 = shalt.err (!%p331_p0)
}
  0x1f   :  { %s342_s1 = smov 128   ;;  %s343_s18 = smov 8  }
  0x20   :  { %48 = dma.hbm_to_vmem [thread:$0]  %s420_s2, 2048, %s43_s16, [#allocation7], %s342_s1, %s342_s1, %s343_s18  }
  0x21   :  { %335 = dma.done.wait [#allocation5], 128  }
  0x22   :  { %336 = vsyncadd [#allocation5], 4294967168 }
  0x23   :  { %337 = dma.done.wait [#allocation7], 2304  }
  0x24   :  { %338 = vsyncadd [#allocation7], 4294964992  ;;  %v344_v0 = vmov 0.0   ;;  %vm345_vm0 = vmmov 0   ;;  %v86_v1 = vld [vmem:[#allocation8 + $0x78] sm:$0xff]  ;;  %v85_v2 = vld [vmem:[#allocation8 + $0x70] sm:$0xff]  ;;  %v167_v18 = vlaneseq  ;;  %v183_v38 = vstv %s424_s6 }
  0x25   :  { %229 = vmatprep.subr.mxu0 %v344_v0  ;;  %261 = vmatprep.mubr.msk.f32.mxu0 %vm345_vm0, %v344_v0  ;;  %v84_v3 = vld [vmem:[#allocation8 + $0x68] sm:$0xff]  ;;  %v83_v4 = vld [vmem:[#allocation8 + $0x60] sm:$0xff]  ;;  %v82_v5 = vld [vmem:[#allocation8 + $0x58] sm:$0xff]  ;;  %v199_v42 = vstv %s425_s7  ;;  %vm202_vm1 = vcmask 7168  }
  0x26   :  { %230 = vmatpush3.msra.mxu0 %v86_v1  ;;  %v81_v6 = vld [vmem:[#allocation8 + $0x50] sm:$0xff]  ;;  %v80_v7 = vld [vmem:[#allocation8 + $0x48] sm:$0xff]  ;;  %v79_v8 = vld [vmem:[#allocation8 + $0x40] sm:$0xff]  ;;  %v168_v19 = vshrl.u32 %v167_v18, 7 }
  0x27   :  { %231 = vmatprep.subr.mxu0 %v344_v0  ;;  %v78_v9 = vld [vmem:[#allocation8 + $0x38] sm:$0xff]  ;;  %v77_v10 = vld [vmem:[#allocation8 + $0x30] sm:$0xff]  ;;  %v76_v11 = vld [vmem:[#allocation8 + $0x28] sm:$0xff] }
  0x28   :  { %232 = vmatpush3.msra.mxu0 %v85_v2  ;;  %v75_v12 = vld [vmem:[#allocation8 + $0x20] sm:$0xff]  ;;  %v74_v13 = vld [vmem:[#allocation8 + $0x18] sm:$0xff]  ;;  %v73_v14 = vld [vmem:[#allocation8 + $0x10] sm:$0xff]  ;;  %v169_v20 = vsub.s32 0, %v168_v19  ;;  %v173_v21 = vsub.s32 1, %v168_v19 }
  0x29   :  { %233 = vmatprep.subr.mxu0 %v344_v0  ;;  %v72_v15 = vld [vmem:[#allocation8 + $0x8] sm:$0xff]  ;;  %v71_v16 = vld [vmem:[#allocation8] sm:$0xff]  ;;  %v69_v17 = vld [vmem:[#allocation6] sm:$0xff] }
  0x2a   :  { %234 = vmatpush3.msra.mxu0 %v84_v3  ;;  %v165_v22 = vld [vmem:[%s422_s4] sm:$0x3]  ;;  %v70_v25 = vld [vmem:[#allocation6 + $0x8] sm:$0xff] }
  0x2b   :  { %235 = vmatprep.subr.mxu0 %v344_v0  ;;  %v170_v23 = vrot.slane %v165_v22, %v169_v20  ;;  %v174_v24 = vrot.slane %v165_v22, %v173_v21  ;;  %v210_v29 = vld [vmem:[%s421_s3] ss:$0 sm:$0xff] }
  0x2c   :  { %236 = vmatpush3.msra.mxu0 %v83_v4  ;;  %v211_v33 = vld [vmem:[%s423_s5] ss:$0 sm:$0xff] }
  0x2d   :  { %237 = vmatprep.subr.mxu0 %v344_v0  ;;  %v177_v26 = vmul.f32 %v170_v23, %v69_v17  ;;  %v178_v27 = vmul.f32 %v174_v24, %v70_v25  ;;  %v68_v35 = vld [vmem:[#allocation4] sm:$0xff] }
  0x2e   :  { %238 = vmatpush3.msra.mxu0 %v82_v5 }
  0x2f   :  { %239 = vmatprep.subr.mxu0 %v344_v0  ;;  %v179_v28 = vadd.f32 %v178_v27, %v177_v26 }
  0x30   :  { %240 = vmatpush3.msra.mxu0 %v81_v6 }
  0x31   :  { %241 = vmatprep.subr.mxu0 %v344_v0  ;;  %180 = vadd.xlane.f32.xlu0 %v179_v28 }
  0x32   :  { %242 = vmatpush3.msra.mxu0 %v80_v7 }
  0x33   :  { %243 = vmatprep.subr.mxu0 %v344_v0 }
  0x34   :  { %244 = vmatpush3.msra.mxu0 %v79_v8 }
  0x35   :  { %245 = vmatprep.subr.mxu0 %v344_v0 }
  0x36   :  { %246 = vmatpush3.msra.mxu0 %v78_v9 }
  0x37   :  { %247 = vmatprep.subr.mxu0 %v344_v0 }
  0x38   :  { %248 = vmatpush3.msra.mxu0 %v77_v10 }
  0x39   :  { %249 = vmatprep.subr.mxu0 %v344_v0 }
  0x3a   :  { %250 = vmatpush3.msra.mxu0 %v76_v11 }
  0x3b   :  { %251 = vmatprep.subr.mxu0 %v344_v0 }
  0x3c   :  { %252 = vmatpush3.msra.mxu0 %v75_v12 }
  0x3d   :  { %253 = vmatprep.subr.mxu0 %v344_v0 }
  0x3e   :  { %254 = vmatpush3.msra.mxu0 %v74_v13 }
  0x3f   :  { %255 = vmatprep.subr.mxu0 %v344_v0 }
  0x40   :  { %256 = vmatpush3.msra.mxu0 %v73_v14 }
  0x41   :  { %257 = vmatprep.subr.mxu0 %v344_v0 }
  0x42   :  { %258 = vmatpush3.msra.mxu0 %v72_v15 }
  0x43   :  { %259 = vmatprep.subr.mxu0 %v344_v0 }
  0x44   :  { %260 = vmatpush3.msra.mxu0 %v71_v16 }
  0x45   :  { %262 = vmatmul.mubr.f32.vlgmr.msra.gmra.mxu0 %v69_v17 }
  0xba   :  { %v181_v39 = vpop.xlane.xlu0 %180 }
  0xbb   :  { %v184_v40 = vadd.f32 %v183_v38, %v181_v39 }
 0x105   :  { %v160_v30 = vpop.f32.mrf.mxu0 }
 0x106   :  { %v161_v31 = vadd.f32 %v210_v29, %v160_v30 }
 0x107   :  { %v263_v32 = vpop.f32.mrf.mxu0 }
 0x108   :  { %271 = vtanh.f32 %v161_v31 }
 0x109   :  { %273 = vtanh.f32 %v184_v40 }
 0x115   :  { %v272_v34 = vpop.eup %271 }
 0x116   :  { %v193_v36 = vadd.f32 %v272_v34, %v211_v33  ;;  %v274_v41 = vpop.eup %273 }
 0x118   :  { %v194_v37 = vmul.f32 %v193_v36, %v68_v35 }
 0x11a   :  { %195 = vadd.xlane.f32.xlu0 %v194_v37 }
 0x1a3   :  { %v196_v43 = vpop.xlane.xlu0 %195 }
 0x1a4   :  { %v197_v44 = vadd.f32 %v274_v41, %v196_v43 }
 0x1a6   :  { %v200_v45 = vadd.f32 %v199_v42, %v197_v44 }
 0x1a8   :  { %v201_v46 = vmul.f32 0.5, %v200_v45 }
 0x1aa   :  { %203 = vst.msk [vmem:[%s426_s8] sm:$0xff] %vm202_vm1, %v201_v46 }
 0x1ab   :  { %208 = vsyncpa [#allocation5], 1 }
 0x1ac   :  { %209 = vsyncpa [#allocation7], 1 }

// kernel: tpu_custom_call.1
= control target key start
LH: loop header
LB: loop body
LE: loop exit
PB: predicated region body
PF: predicated region fallthrough
CT: control target
= control target key end

     0   :  { %15 = vsyncpa [#allocation5], 0  ;;  %s418_s0 = inlined_call_operand.hbm [shape: f32[8,128], index: 0, kind: input, shape index: {}]   ;;  %s419_s1 = inlined_call_operand.hbm [shape: f32[8,256], index: 1, kind: input, shape index: {}]   ;;  %s420_s2 = inlined_call_operand.hbm [shape: f32[128,128], index: 2, kind: input, shape index: {}]   ;;  %s421_s3 = inlined_call_operand.vmem [shape: f32[1,128], index: 3, kind: input, shape index: {}]   ;;  %s422_s4 = inlined_call_operand.vmem [shape: f32[1,256], index: 4, kind: input, shape index: {}]   ;;  %s423_s5 = inlined_call_operand.vmem [shape: f32[1,128], index: 5, kind: input, shape index: {}]   ;;  %s424_s6 = inlined_call_operand.<no memory space> [shape: f32[1,1], index: 6, kind: input, shape index: {}]   ;;  %s425_s7 = inlined_call_operand.<no memory space> [shape: f32[1,1], index: 7, kind: input, shape index: {}]   ;;  %s426_s8 = inlined_call_operand.vmem [shape: f32[8,1], index: 8, kind: output, shape index: {}]  }
   0x1   :  { %16 = vsyncpa [#allocation7], 0  ;;  %s339_s27 = smov [#allocation6]   ;;  %s340_s29 = smov [#allocation4]  }
   0x2   :  { %s33_s28 = sshll.u32 %s339_s27, 4  ;;  %s23_s30 = sshll.u32 %s340_s29, 4  ;;  %s34_s28 = int_to_ptr.vmem [resolvable:$true] %s33_s28  ;;  %s24_s30 = int_to_ptr.vmem [resolvable:$true] %s23_s30 }
   0x3   :  { %s283_s9 = scalar_lea.vmem %s34_s28, 256  ;;  %p288_p1 = scmp.lt.s32.totalorder %s34_s28, %s34_s28 }
   0x4   :  { %p284_p0 = scmp.ne.s32.totalorder %s34_s28, %s283_s9  ;;  %p289_p2 = scmp.lt.s32.totalorder %s283_s9, %s283_s9 }
   0x6   :  { %p290_p3 = por %p289_p2, %p288_p1 }
   0x8   :  { %p291_p4 = pnand %p290_p3, %p284_p0 }
   0xa   :  { %294 = shalt.err (!%p291_p4)
}
   0xb   :  { %36 = dma.hbm_to_vmem [thread:$0]  %s419_s1, 256, %s34_s28, [#allocation7]  }
   0xc   :  { %s303_s12 = scalar_lea.vmem %s24_s30, 128  ;;  %p308_p6 = scmp.lt.s32.totalorder %s24_s30, %s24_s30 }
   0xd   :  { %p304_p5 = scmp.ne.s32.totalorder %s24_s30, %s303_s12  ;;  %p309_p7 = scmp.lt.s32.totalorder %s303_s12, %s303_s12 }
   0xf   :  { %p310_p8 = por %p309_p7, %p308_p6 }
  0x11   :  { %p311_p9 = pnand %p310_p8, %p304_p5 }
  0x13   :  { %314 = shalt.err (!%p311_p9)
}
  0x14   :  { %26 = dma.hbm_to_vmem [thread:$0]  %s418_s0, 128, %s24_s30, [#allocation5]  }
  0x15   :  { %s341_s15 = smov [#allocation8]  }
  0x16   :  { %s42_s16 = sshll.u32 %s341_s15, 4  ;;  %s43_s16 = int_to_ptr.vmem [resolvable:$true] %s42_s16 }
  0x17   :  { %s323_s17 = scalar_lea.vmem %s43_s16, 2048  ;;  %p328_p11 = scmp.lt.s32.totalorder %s43_s16, %s43_s16 }
  0x18   :  { %p324_p10 = scmp.ne.s32.totalorder %s43_s16, %s323_s17  ;;  %p329_p12 = scmp.lt.s32.totalorder %s323_s17, %s323_s17 }
  0x1a   :  { %p330_p13 = por %p329_p12, %p328_p11 }
  0x1c   :  { %p331_p0 = pnand %p330_p13, %p324_p10 }
  0x1e   :  { %334 = shalt.err (!%p331_p0)
}
  0x1f   :  { %s342_s1 = smov 128   ;;  %s343_s18 = smov 8  }
  0x20   :  { %48 = dma.hbm_to_vmem [thread:$0]  %s420_s2, 2048, %s43_s16, [#allocation7], %s342_s1, %s342_s1, %s343_s18  }
  0x21   :  { %335 = dma.done.wait [#allocation5], 128  }
  0x22   :  { %336 = vsyncadd [#allocation5], 4294967168 }
  0x23   :  { %337 = dma.done.wait [#allocation7], 2304  }
  0x24   :  { %338 = vsyncadd [#allocation7], 4294964992  ;;  %v344_v0 = vmov 0.0   ;;  %vm345_vm0 = vmmov 0   ;;  %v86_v1 = vld [vmem:[#allocation8 + $0x78] sm:$0xff]  ;;  %v85_v2 = vld [vmem:[#allocation8 + $0x70] sm:$0xff]  ;;  %v167_v18 = vlaneseq  ;;  %v183_v38 = vstv %s424_s6 }
  0x25   :  { %229 = vmatprep.subr.mxu0 %v344_v0  ;;  %261 = vmatprep.mubr.msk.f32.mxu0 %vm345_vm0, %v344_v0  ;;  %v84_v3 = vld [vmem:[#allocation8 + $0x68] sm:$0xff]  ;;  %v83_v4 = vld [vmem:[#allocation8 + $0x60] sm:$0xff]  ;;  %v82_v5 = vld [vmem:[#allocation8 + $0x58] sm:$0xff]  ;;  %v199_v42 = vstv %s425_s7  ;;  %vm202_vm1 = vcmask 7168  }
  0x26   :  { %230 = vmatpush3.msra.mxu0 %v86_v1  ;;  %v81_v6 = vld [vmem:[#allocation8 + $0x50] sm:$0xff]  ;;  %v80_v7 = vld [vmem:[#allocation8 + $0x48] sm:$0xff]  ;;  %v79_v8 = vld [vmem:[#allocation8 + $0x40] sm:$0xff]  ;;  %v168_v19 = vshrl.u32 %v167_v18, 7 }
  0x27   :  { %231 = vmatprep.subr.mxu0 %v344_v0  ;;  %v78_v9 = vld [vmem:[#allocation8 + $0x38] sm:$0xff]  ;;  %v77_v10 = vld [vmem:[#allocation8 + $0x30] sm:$0xff]  ;;  %v76_v11 = vld [vmem:[#allocation8 + $0x28] sm:$0xff] }
  0x28   :  { %232 = vmatpush3.msra.mxu0 %v85_v2  ;;  %v75_v12 = vld [vmem:[#allocation8 + $0x20] sm:$0xff]  ;;  %v74_v13 = vld [vmem:[#allocation8 + $0x18] sm:$0xff]  ;;  %v73_v14 = vld [vmem:[#allocation8 + $0x10] sm:$0xff]  ;;  %v169_v20 = vsub.s32 0, %v168_v19  ;;  %v173_v21 = vsub.s32 1, %v168_v19 }
  0x29   :  { %233 = vmatprep.subr.mxu0 %v344_v0  ;;  %v72_v15 = vld [vmem:[#allocation8 + $0x8] sm:$0xff]  ;;  %v71_v16 = vld [vmem:[#allocation8] sm:$0xff]  ;;  %v69_v17 = vld [vmem:[#allocation6] sm:$0xff] }
  0x2a   :  { %234 = vmatpush3.msra.mxu0 %v84_v3  ;;  %v165_v22 = vld [vmem:[%s422_s4] sm:$0x3]  ;;  %v70_v25 = vld [vmem:[#allocation6 + $0x8] sm:$0xff] }
  0x2b   :  { %235 = vmatprep.subr.mxu0 %v344_v0  ;;  %v170_v23 = vrot.slane %v165_v22, %v169_v20  ;;  %v174_v24 = vrot.slane %v165_v22, %v173_v21  ;;  %v210_v29 = vld [vmem:[%s421_s3] ss:$0 sm:$0xff] }
  0x2c   :  { %236 = vmatpush3.msra.mxu0 %v83_v4  ;;  %v211_v33 = vld [vmem:[%s423_s5] ss:$0 sm:$0xff] }
  0x2d   :  { %237 = vmatprep.subr.mxu0 %v344_v0  ;;  %v177_v26 = vmul.f32 %v170_v23, %v69_v17  ;;  %v178_v27 = vmul.f32 %v174_v24, %v70_v25  ;;  %v68_v35 = vld [vmem:[#allocation4] sm:$0xff] }
  0x2e   :  { %238 = vmatpush3.msra.mxu0 %v82_v5 }
  0x2f   :  { %239 = vmatprep.subr.mxu0 %v344_v0  ;;  %v179_v28 = vadd.f32 %v178_v27, %v177_v26 }
  0x30   :  { %240 = vmatpush3.msra.mxu0 %v81_v6 }
  0x31   :  { %241 = vmatprep.subr.mxu0 %v344_v0  ;;  %180 = vadd.xlane.f32.xlu0 %v179_v28 }
  0x32   :  { %242 = vmatpush3.msra.mxu0 %v80_v7 }
  0x33   :  { %243 = vmatprep.subr.mxu0 %v344_v0 }
  0x34   :  { %244 = vmatpush3.msra.mxu0 %v79_v8 }
  0x35   :  { %245 = vmatprep.subr.mxu0 %v344_v0 }
  0x36   :  { %246 = vmatpush3.msra.mxu0 %v78_v9 }
  0x37   :  { %247 = vmatprep.subr.mxu0 %v344_v0 }
  0x38   :  { %248 = vmatpush3.msra.mxu0 %v77_v10 }
  0x39   :  { %249 = vmatprep.subr.mxu0 %v344_v0 }
  0x3a   :  { %250 = vmatpush3.msra.mxu0 %v76_v11 }
  0x3b   :  { %251 = vmatprep.subr.mxu0 %v344_v0 }
  0x3c   :  { %252 = vmatpush3.msra.mxu0 %v75_v12 }
  0x3d   :  { %253 = vmatprep.subr.mxu0 %v344_v0 }
  0x3e   :  { %254 = vmatpush3.msra.mxu0 %v74_v13 }
  0x3f   :  { %255 = vmatprep.subr.mxu0 %v344_v0 }
  0x40   :  { %256 = vmatpush3.msra.mxu0 %v73_v14 }
  0x41   :  { %257 = vmatprep.subr.mxu0 %v344_v0 }
  0x42   :  { %258 = vmatpush3.msra.mxu0 %v72_v15 }
  0x43   :  { %259 = vmatprep.subr.mxu0 %v344_v0 }
  0x44   :  { %260 = vmatpush3.msra.mxu0 %v71_v16 }
  0x45   :  { %262 = vmatmul.mubr.f32.vlgmr.msra.gmra.mxu0 %v69_v17 }
  0xba   :  { %v181_v39 = vpop.xlane.xlu0 %180 }
  0xbb   :  { %v184_v40 = vadd.f32 %v183_v38, %v181_v39 }
 0x105   :  { %v160_v30 = vpop.f32.mrf.mxu0 }
 0x106   :  { %v161_v31 = vadd.f32 %v210_v29, %v160_v30 }
 0x107   :  { %v263_v32 = vpop.f32.mrf.mxu0 }
 0x108   :  { %271 = vtanh.f32 %v161_v31 }
 0x109   :  { %273 = vtanh.f32 %v184_v40 }
 0x115   :  { %v272_v34 = vpop.eup %271 }
 0x116   :  { %v193_v36 = vadd.f32 %v272_v34, %v211_v33  ;;  %v274_v41 = vpop.eup %273 }
 0x118   :  { %v194_v37 = vmul.f32 %v193_v36, %v68_v35 }
 0x11a   :  { %195 = vadd.xlane.f32.xlu0 %v194_v37 }
 0x1a3   :  { %v196_v43 = vpop.xlane.xlu0 %195 }
 0x1a4   :  { %v197_v44 = vadd.f32 %v274_v41, %v196_v43 }
 0x1a6   :  { %v200_v45 = vadd.f32 %v199_v42, %v197_v44 }
 0x1a8   :  { %v201_v46 = vmul.f32 0.5, %v200_v45 }
 0x1aa   :  { %203 = vst.msk [vmem:[%s426_s8] sm:$0xff] %vm202_vm1, %v201_v46 }
 0x1ab   :  { %208 = vsyncpa [#allocation5], 1 }
 0x1ac   :  { %209 = vsyncpa [#allocation7], 1 }

</bundles_post_ra>
